<compile_context>
chip_gen: v5e
topology: v5e:2x2
jax: 0.10.0
libtpu: 0.0.40
codegen_flags: <defaults>
</compile_context>

<pallas_src>
import math

import numpy as np

import jax
import jax.numpy as jnp
from jax.experimental import pallas as pl
from jax.experimental.pallas import tpu as pltpu

_HALF_LOG_2PI = 0.5 * math.log(2.0 * math.pi)

_CHUNK_ROWS = 16        # inner-loop tile: (16, 128) f32 = 2 vregs per value
_MIN_BLOCK_ROWS = 16    # >= 2048 samples per grid step (amortize step overhead)
_MAX_BLOCK_ROWS = 256   # 32768 samples per grid step; input block = 256 KiB


def _round_up(x, m):
    return ((x + m - 1) // m) * m


def _make_gm_kernel(mu, inv_sd, c, chunk_rows):
    """Bakes the fixed mixture parameters into the kernel as constants.

    Expanded-quadratic form (constant-folded in float64 at build time):
        score_k(x) = sum_d qc[k,d]*x_d^2 + a[k,d]*x_d + cb[k]
        qc = -0.5/sd^2,   a = mu/sd^2,   cb = c_k - 0.5*sum_d (mu/sd)^2
        logp(x)    = logsumexp_k score_k(x)
    """
    mu = np.asarray(mu, np.float64)
    inv_sd = np.asarray(inv_sd, np.float64)
    c = np.asarray(c, np.float64)
    K, D = mu.shape

    is2 = inv_sd * inv_sd
    qc = -0.5 * is2                       # (K, D) quadratic coefficients
    a = is2 * mu                          # (K, D) linear coefficients
    cb = c + (qc * mu * mu).sum(-1)       # (K,)   per-component constants

    # FixedPrior: identical std for every (k, d) -> one shared curvature term.
    shared_q = bool(np.ptp(qc) <= 1e-12 * max(1.0, float(np.max(np.abs(qc)))))
    qc0 = float(qc[0, 0])
    qc_l, a_l, cb_l = qc.tolist(), a.tolist(), cb.tolist()

    def kernel(x_ref, out_ref):
        # x_ref: (D, ROWS, 128), out_ref: (ROWS, 128); ROWS % chunk_rows == 0.
        rows = out_ref.shape[0]
        assert rows % chunk_rows == 0
        n_chunks = rows // chunk_rows

        def chunk_body(ci, carry):
            r0 = pl.multiple_of(ci * chunk_rows, chunk_rows)
            xs = [x_ref[d, pl.ds(r0, chunk_rows), :].astype(jnp.float32)
                  for d in range(D)]                         # D x (CH, 128)
            xsq = [xd * xd for xd in xs]

            if shared_q:
                ssq = xsq[0]
                for d in range(1, D):
                    ssq = ssq + xsq[d]
                q_shared = qc0 * ssq                         # shared across k

            # Per-component scores; dedupe |a| products (FixedPrior -> 2 muls).
            prods = {}
            scores = []
            for k in range(K):
                if shared_q:
                    s_k = q_shared
                else:
                    s_k = qc_l[k][0] * xsq[0]
                    for d in range(1, D):
                        s_k = s_k + qc_l[k][d] * xsq[d]
                for d in range(D):
                    coef = a_l[k][d]
                    if coef == 0.0:
                        continue
                    key = (d, abs(coef))
                    if key not in prods:
                        prods[key] = abs(coef) * xs[d]
                    s_k = (s_k + prods[key]) if coef > 0.0 else (s_k - prods[key])
                scores.append(s_k + cb_l[k])

            # logsumexp over the K components: per-row max / exp-sum on the
            # VPU + EUP (no cross-lane reduction, no MXU).
            m = scores[0]
            for k in range(1, K):
                m = jnp.maximum(m, scores[k])
            s = jnp.exp(scores[0] - m)
            for k in range(1, K):
                s = s + jnp.exp(scores[k] - m)
            out_ref[pl.ds(r0, chunk_rows), :] = (m + jnp.log(s)).astype(out_ref.dtype)
            return carry

        jax.lax.fori_loop(0, n_chunks, chunk_body, 0)

    return kernel


def _gm_logprob_2d(x2d, kernel):
    """x2d: (N, D) samples. Returns (N, 1) float32 log-probs."""
    n, d = x2d.shape
    n_rows = pl.cdiv(n, 128)
    n_rows_pad = max(_round_up(n_rows, _CHUNK_ROWS), _CHUNK_ROWS)
    n_pad = n_rows_pad * 128

    # Block rows: multiple of the chunk, sized for >= 2 grid steps when there
    # is enough work (so v7x's two TensorCores both run), capped for VMEM.
    rows_blk = min(_MAX_BLOCK_ROWS,
                   max(_MIN_BLOCK_ROWS,
                       _round_up(pl.cdiv(n_rows_pad, 2), _CHUNK_ROWS)))
    rows_blk = min(rows_blk, n_rows_pad)

    # Single fused copy (pad + transpose + reshape fuse under jit) producing the
    # sublane+lane dense (D, rows, 128) layout.  Pad lanes are zeros -> finite
    # scores -> sliced off at the end.
    x_pad = jnp.pad(x2d.astype(jnp.float32), ((0, n_pad - n), (0, 0)))
    xr = jnp.transpose(x_pad, (1, 0)).reshape(d, n_rows_pad, 128)

    out = pl.pallas_call(
        kernel,
        out_shape=jax.ShapeDtypeStruct((n_rows_pad, 128), jnp.float32),
        grid=(pl.cdiv(n_rows_pad, rows_blk),),
        in_specs=[pl.BlockSpec((d, rows_blk, 128), lambda i: (0, i, 0))],
        out_specs=pl.BlockSpec((rows_blk, 128), lambda i: (i, 0)),
        compiler_params=pltpu.CompilerParams(
            dimension_semantics=("parallel",)),
    )(xr)
    return out.reshape(n_pad)[:n][:, None]                   # (N, 1)


class GaussianMixturePallas:
    """JAX/Pallas port of GaussianMixture (log_prob only)."""

    def __init__(self, mean, std, weights):
        mean_np = np.asarray(mean, dtype=np.float64)
        std_np = np.asarray(std, dtype=np.float64)
        w_np = np.asarray(weights, dtype=np.float64)
        assert mean_np.shape == std_np.shape, 'Mean and std do not have the same shape.'
        assert w_np.ndim == 2, 'Expected number of weight dimensions to be 2'
        assert mean_np.shape[1] == w_np.shape[1]

        self.mean = jnp.asarray(mean_np, jnp.float32)         # (1, K, D)
        self.std = jnp.asarray(std_np, jnp.float32)           # (1, K, D)
        self.K = mean_np.shape[1]
        self.weights = jnp.asarray(w_np.reshape(-1, self.K), jnp.float32)

        # The prior is fixed: fold all parameters into kernel constants.
        assert mean_np.shape[0] == 1, 'TODO(synk): batched (N>1) means not supported'
        w_rows = w_np.reshape(-1, self.K)
        assert np.allclose(w_rows, w_rows[0]), 'TODO(synk): per-row weights not supported'

        mu = mean_np[0]                                        # (K, D)
        sd = std_np[0]                                         # (K, D)
        w = w_rows[0]                                          # (K,)
        d_dims = mu.shape[1]
        inv_sd = 1.0 / sd
        c = np.log(w) - np.log(sd).sum(-1) - d_dims * _HALF_LOG_2PI
        kernel = _make_gm_kernel(mu, inv_sd, c, _CHUNK_ROWS)
        self._logprob_2d = jax.jit(lambda x2d: _gm_logprob_2d(x2d, kernel))

    def log_prob(self, x):
        # Supports x of shape (N, 1, D) or (N, D); returns (N, 1) like torch.
        if x.ndim == 3:
            assert x.shape[1] == 1 and x.shape[2] == self.mean.shape[2]
            x2d = x[:, 0, :]
        elif x.ndim == 2:
            x2d = x
        else:
            raise TypeError('Input shape is not compatible')
        return self._logprob_2d(x2d)

    # TODO(synk): sample() needs Categorical sampling + fancy indexing; not a
    # kernel hot path, left unimplemented.


class FixedPriorPallas:
    """JAX port of FixedPrior.__init__ / forward (deterministic parameters)."""

    def __init__(self, max_val=2.0, std=0.6):
        del std  # the torch module hardcodes 0.6 regardless of the argument
        means = jnp.array(
            [[0.0, 0.0], [0.0, -max_val], [0.0, max_val], [max_val, 0.0],
             [-max_val, 0.0], [-max_val, -max_val], [max_val, max_val],
             [-max_val, max_val], [max_val, -max_val]],
            dtype=jnp.float32)[None]                           # (1, 9, 2)
        self.means = means
        self.std = jnp.full((1, 9, 2), 0.6, dtype=jnp.float32)
        self.mixture_weights = jnp.ones((1, 9), jnp.float32) / 9.0

    def forward(self):
        return GaussianMixturePallas(self.means, self.std, self.mixture_weights)


def _reference_log_prob(x, mean, std, weights):
    # Pure-JAX reference mirroring the torch semantics.
    x_b = x if x.ndim == 3 else x[:, None, :]                  # (N, 1, D)
    lp = (-0.5 * ((x_b - mean) / std) ** 2
          - jnp.log(std) - _HALF_LOG_2PI)                      # (N, K, D)
    log_wx = lp.sum(-1) + jnp.log(weights)                     # (N, K)
    return jax.scipy.special.logsumexp(log_wx, axis=-1, keepdims=True)


if __name__ == "__main__":
    key = jax.random.PRNGKey(0)
    prior = FixedPriorPallas()
    mix = prior.forward()

    # Small (N, 1, D) input, as the VAE uses it.
    N, D = 16, 2
    k1, k2 = jax.random.split(key)
    x = jax.random.normal(k1, (N, 1, D), dtype=jnp.float32)
    logp = mix.log_prob(x)
    jax.block_until_ready(logp)
    ref = _reference_log_prob(x, prior.means, prior.std, prior.mixture_weights)
    assert logp.shape == (N, 1)
    assert jnp.allclose(logp, ref, atol=1e-4, rtol=1e-5), (logp, ref)

    # Larger (N, D) input: exercises the multi-step grid, lane padding and the
    # partial last block.
    N2 = 4500
    x2 = 2.0 * jax.random.normal(k2, (N2, D), dtype=jnp.float32)
    logp2 = mix.log_prob(x2)
    jax.block_until_ready(logp2)
    ref2 = _reference_log_prob(x2, prior.means, prior.std, prior.mixture_weights)
    assert logp2.shape == (N2, 1)
    assert jnp.allclose(logp2, ref2, atol=1e-4, rtol=1e-5), (logp2, ref2)

    print("KERNEL_OK")
</pallas_src>

<mosaic_0001>
module attributes {stable_mosaic.version = 11 : i64} {
  func.func @kernel(%arg0: i32, %arg1: memref<2x16x128xf32, #tpu.memory_space<vmem>>, %arg2: memref<16x128xf32, #tpu.memory_space<vmem>>) attributes {dimension_semantics = [#tpu.dimension_semantics<parallel>], iteration_bounds = array<i64: 1>, scalar_prefetch = 0 : i64, scratch_operands = 0 : i64, tpu.core_type = #tpu.core_type<tc>, window_params = [{transform_indices = @transform_0, window_bounds = array<i64: 2, 16, 128>}, {transform_indices = @transform_1, window_bounds = array<i64: 16, 128>}]} {
    %c0_i32 = arith.constant 0 : i32
    %c16_i32 = arith.constant 16 : i32
    %0 = arith.muli %c0_i32, %c16_i32 : i32
    %1 = tpu.assume_multiple %0, 16 : i32
    %c0 = arith.constant 0 : index
    %2 = arith.index_cast %1 : i32 to index
    %c0_0 = arith.constant 0 : index
    %3 = vector.load %arg1[%c0, %2, %c0_0] : memref<2x16x128xf32, #tpu.memory_space<vmem>>, vector<1x16x128xf32>
    %4 = vector.shape_cast %3 : vector<1x16x128xf32> to vector<16x128xf32>
    %c1 = arith.constant 1 : index
    %5 = arith.index_cast %1 : i32 to index
    %c0_1 = arith.constant 0 : index
    %6 = vector.load %arg1[%c1, %5, %c0_1] : memref<2x16x128xf32, #tpu.memory_space<vmem>>, vector<1x16x128xf32>
    %7 = vector.shape_cast %6 : vector<1x16x128xf32> to vector<16x128xf32>
    %8 = arith.mulf %4, %4 : vector<16x128xf32>
    %9 = arith.mulf %7, %7 : vector<16x128xf32>
    %10 = arith.addf %8, %9 : vector<16x128xf32>
    %cst = arith.constant -1.38888884 : f32
    %11 = vector.broadcast %cst : f32 to vector<16x128xf32>
    %12 = arith.mulf %11, %10 : vector<16x128xf32>
    %cst_2 = arith.constant -3.01345038 : f32
    %13 = vector.broadcast %cst_2 : f32 to vector<16x128xf32>
    %14 = arith.addf %12, %13 : vector<16x128xf32>
    %cst_3 = arith.constant 5.55555534 : f32
    %15 = vector.broadcast %cst_3 : f32 to vector<16x128xf32>
    %16 = arith.mulf %15, %7 : vector<16x128xf32>
    %17 = arith.subf %12, %16 : vector<16x128xf32>
    %cst_4 = arith.constant -8.56900596 : f32
    %18 = vector.broadcast %cst_4 : f32 to vector<16x128xf32>
    %19 = arith.addf %17, %18 : vector<16x128xf32>
    %20 = arith.addf %12, %16 : vector<16x128xf32>
    %cst_5 = arith.constant -8.56900596 : f32
    %21 = vector.broadcast %cst_5 : f32 to vector<16x128xf32>
    %22 = arith.addf %20, %21 : vector<16x128xf32>
    %cst_6 = arith.constant 5.55555534 : f32
    %23 = vector.broadcast %cst_6 : f32 to vector<16x128xf32>
    %24 = arith.mulf %23, %4 : vector<16x128xf32>
    %25 = arith.addf %12, %24 : vector<16x128xf32>
    %cst_7 = arith.constant -8.56900596 : f32
    %26 = vector.broadcast %cst_7 : f32 to vector<16x128xf32>
    %27 = arith.addf %25, %26 : vector<16x128xf32>
    %28 = arith.subf %12, %24 : vector<16x128xf32>
    %cst_8 = arith.constant -8.56900596 : f32
    %29 = vector.broadcast %cst_8 : f32 to vector<16x128xf32>
    %30 = arith.addf %28, %29 : vector<16x128xf32>
    %31 = arith.subf %12, %24 : vector<16x128xf32>
    %32 = arith.subf %31, %16 : vector<16x128xf32>
    %cst_9 = arith.constant -14.1245604 : f32
    %33 = vector.broadcast %cst_9 : f32 to vector<16x128xf32>
    %34 = arith.addf %32, %33 : vector<16x128xf32>
    %35 = arith.addf %12, %24 : vector<16x128xf32>
    %36 = arith.addf %35, %16 : vector<16x128xf32>
    %cst_10 = arith.constant -14.1245604 : f32
    %37 = vector.broadcast %cst_10 : f32 to vector<16x128xf32>
    %38 = arith.addf %36, %37 : vector<16x128xf32>
    %39 = arith.subf %12, %24 : vector<16x128xf32>
    %40 = arith.addf %39, %16 : vector<16x128xf32>
    %cst_11 = arith.constant -14.1245604 : f32
    %41 = vector.broadcast %cst_11 : f32 to vector<16x128xf32>
    %42 = arith.addf %40, %41 : vector<16x128xf32>
    %43 = arith.addf %12, %24 : vector<16x128xf32>
    %44 = arith.subf %43, %16 : vector<16x128xf32>
    %cst_12 = arith.constant -14.1245604 : f32
    %45 = vector.broadcast %cst_12 : f32 to vector<16x128xf32>
    %46 = arith.addf %44, %45 : vector<16x128xf32>
    %47 = arith.maximumf %14, %19 : vector<16x128xf32>
    %48 = arith.maximumf %47, %22 : vector<16x128xf32>
    %49 = arith.maximumf %48, %27 : vector<16x128xf32>
    %50 = arith.maximumf %49, %30 : vector<16x128xf32>
    %51 = arith.maximumf %50, %34 : vector<16x128xf32>
    %52 = arith.maximumf %51, %38 : vector<16x128xf32>
    %53 = arith.maximumf %52, %42 : vector<16x128xf32>
    %54 = arith.maximumf %53, %46 : vector<16x128xf32>
    %55 = arith.subf %14, %54 : vector<16x128xf32>
    %56 = math.exp %55 : vector<16x128xf32>
    %57 = arith.subf %19, %54 : vector<16x128xf32>
    %58 = math.exp %57 : vector<16x128xf32>
    %59 = arith.addf %56, %58 : vector<16x128xf32>
    %60 = arith.subf %22, %54 : vector<16x128xf32>
    %61 = math.exp %60 : vector<16x128xf32>
    %62 = arith.addf %59, %61 : vector<16x128xf32>
    %63 = arith.subf %27, %54 : vector<16x128xf32>
    %64 = math.exp %63 : vector<16x128xf32>
    %65 = arith.addf %62, %64 : vector<16x128xf32>
    %66 = arith.subf %30, %54 : vector<16x128xf32>
    %67 = math.exp %66 : vector<16x128xf32>
    %68 = arith.addf %65, %67 : vector<16x128xf32>
    %69 = arith.subf %34, %54 : vector<16x128xf32>
    %70 = math.exp %69 : vector<16x128xf32>
    %71 = arith.addf %68, %70 : vector<16x128xf32>
    %72 = arith.subf %38, %54 : vector<16x128xf32>
    %73 = math.exp %72 : vector<16x128xf32>
    %74 = arith.addf %71, %73 : vector<16x128xf32>
    %75 = arith.subf %42, %54 : vector<16x128xf32>
    %76 = math.exp %75 : vector<16x128xf32>
    %77 = arith.addf %74, %76 : vector<16x128xf32>
    %78 = arith.subf %46, %54 : vector<16x128xf32>
    %79 = math.exp %78 : vector<16x128xf32>
    %80 = arith.addf %77, %79 : vector<16x128xf32>
    %81 = math.log %80 : vector<16x128xf32>
    %82 = arith.addf %54, %81 : vector<16x128xf32>
    %83 = arith.index_cast %1 : i32 to index
    %c0_13 = arith.constant 0 : index
    %84 = vector.load %arg2[%83, %c0_13] : memref<16x128xf32, #tpu.memory_space<vmem>>, vector<16x128xf32>
    tpu.vector_store %arg2[%83, %c0_13], %82 {strides = array<i32>} : memref<16x128xf32, #tpu.memory_space<vmem>>, vector<16x128xf32>,
    %c1_i32 = arith.constant 1 : i32
    return
  }
  func.func @transform_0(%arg0: i32) -> (i32, i32, i32) {
    %c0_i32 = arith.constant 0 : i32
    %c0_i32_0 = arith.constant 0 : i32
    %c0_i32_1 = arith.constant 0 : i32
    return %c0_i32, %arg0, %c0_i32_0 : i32, i32, i32
  }
  func.func @transform_1(%arg0: i32) -> (i32, i32) {
    %c0_i32 = arith.constant 0 : i32
    %c0_i32_0 = arith.constant 0 : i32
    return %arg0, %c0_i32 : i32, i32
  }
}

</mosaic_0001>

<bundles_post_ra>
// kernel: _lambda_.1
= control target key start
LH: loop header
LB: loop body
LE: loop exit
PB: predicated region body
PF: predicated region fallthrough
CT: control target
= control target key end

     0   :  { %s265_s0 = inlined_call_operand.vmem [shape: f32[2,16,128], index: 0, kind: input, shape index: {}]   ;;  %s266_s1 = inlined_call_operand.vmem [shape: f32[16,128], index: 1, kind: output, shape index: {}]  }
   0x1   :  { %v8_v0 = vld [vmem:[%s265_s0] sm:$0xff]  ;;  %v9_v1 = vld [vmem:[%s265_s0 + $0x8] sm:$0xff]  ;;  %v159_v2 = vld [vmem:[%s265_s0 + $0x10] sm:$0xff] }
   0x2   :  { %v160_v3 = vld [vmem:[%s265_s0 + $0x18] sm:$0xff]  ;;  %v14_v4 = vmul.f32 %v8_v0, %v8_v0  ;;  %v15_v5 = vmul.f32 %v9_v1, %v9_v1  ;;  %v16_v6 = vmul.f32 %v159_v2, %v159_v2  ;;  %v24_v9 = vmul.f32 5.5555553, %v159_v2 }
   0x3   :  { %v17_v7 = vmul.f32 %v160_v3, %v160_v3  ;;  %v25_v11 = vmul.f32 5.5555553, %v160_v3  ;;  %v34_v14 = vmul.f32 5.5555553, %v8_v0  ;;  %v35_v15 = vmul.f32 5.5555553, %v9_v1 }
   0x4   :  { %v18_v8 = vadd.f32 %v16_v6, %v14_v4 }
   0x5   :  { %v19_v10 = vadd.f32 %v17_v7, %v15_v5 }
   0x6   :  { %v20_v12 = vmul.f32 -1.3888888, %v18_v8 }
   0x7   :  { %v21_v13 = vmul.f32 -1.3888888, %v19_v10 }
   0x8   :  { %v26_v16 = vsub.f32 %v20_v12, %v24_v9  ;;  %v30_v18 = vadd.f32 %v24_v9, %v20_v12  ;;  %v22_v20 = vadd.f32 -3.0134504, %v20_v12  ;;  %v36_v22 = vadd.f32 %v34_v14, %v20_v12 }
   0x9   :  { %v27_v17 = vsub.f32 %v21_v13, %v25_v11  ;;  %v31_v19 = vadd.f32 %v25_v11, %v21_v13  ;;  %v23_v21 = vadd.f32 -3.0134504, %v21_v13  ;;  %v37_v23 = vadd.f32 %v35_v15, %v21_v13 }
   0xa   :  { %v28_v24 = vadd.f32 -8.569006, %v26_v16  ;;  %v40_v26 = vsub.f32 %v20_v12, %v34_v14  ;;  %v41_v27 = vsub.f32 %v21_v13, %v35_v15  ;;  %v32_v28 = vadd.f32 -8.569006, %v30_v18 }
   0xb   :  { %v29_v25 = vadd.f32 -8.569006, %v27_v17  ;;  %v33_v29 = vadd.f32 -8.569006, %v31_v19  ;;  %v38_v30 = vadd.f32 -8.569006, %v36_v22  ;;  %v48_v36 = vadd.f32 %v36_v22, %v24_v9 }
   0xc   :  { %v39_v31 = vadd.f32 -8.569006, %v37_v23  ;;  %v44_v32 = vsub.f32 %v40_v26, %v24_v9  ;;  %v45_v33 = vsub.f32 %v41_v27, %v25_v11  ;;  %v60_v34 = vmax.f32 %v22_v20, %v28_v24 }
   0xd   :  { %v61_v35 = vmax.f32 %v23_v21, %v29_v25  ;;  %v49_v37 = vadd.f32 %v37_v23, %v25_v11  ;;  %v42_v38 = vadd.f32 -8.569006, %v40_v26  ;;  %v43_v39 = vadd.f32 -8.569006, %v41_v27 }
   0xe   :  { %v62_v40 = vmax.f32 %v60_v34, %v32_v28  ;;  %v52_v42 = vadd.f32 %v40_v26, %v24_v9  ;;  %v53_v43 = vadd.f32 %v41_v27, %v25_v11  ;;  %v46_v44 = vadd.f32 -14.12456, %v44_v32 }
   0xf   :  { %v63_v41 = vmax.f32 %v61_v35, %v33_v29  ;;  %v47_v45 = vadd.f32 -14.12456, %v45_v33  ;;  %v50_v48 = vadd.f32 -14.12456, %v48_v36  ;;  %v51_v49 = vadd.f32 -14.12456, %v49_v37 }
  0x10   :  { %v64_v46 = vmax.f32 %v62_v40, %v38_v30  ;;  %v56_v50 = vsub.f32 %v36_v22, %v24_v9  ;;  %v57_v51 = vsub.f32 %v37_v23, %v25_v11  ;;  %v54_v54 = vadd.f32 -14.12456, %v52_v42 }
  0x11   :  { %v65_v47 = vmax.f32 %v63_v41, %v39_v31  ;;  %v223_v55 = vadd.f32 -14.12456, %v53_v43 }
  0x12   :  { %v66_v52 = vmax.f32 %v64_v46, %v42_v38  ;;  %v225_v58 = vadd.f32 -14.12456, %v56_v50  ;;  %v227_v59 = vadd.f32 -14.12456, %v57_v51 }
  0x13   :  { %v67_v53 = vmax.f32 %v65_v47, %v43_v39 }
  0x14   :  { %v68_v56 = vmax.f32 %v66_v52, %v46_v44 }
  0x15   :  { %v69_v57 = vmax.f32 %v67_v53, %v47_v45 }
  0x16   :  { %v70_v60 = vmax.f32 %v68_v56, %v50_v48 }
  0x17   :  { %v71_v61 = vmax.f32 %v69_v57, %v51_v49 }
  0x18   :  { %v72_v62 = vmax.f32 %v70_v60, %v54_v54 }
  0x19   :  { %v73_v63 = vmax.f32 %v71_v61, %v223_v55 }
  0x1a   :  { %v231_v0 = vmax.f32 %v72_v62, %v225_v58 }
  0x1b   :  { %v234_v1 = vmax.f32 %v73_v63, %v227_v59 }
  0x1c   :  { %v76_v2 = vsub.f32 %v22_v20, %v231_v0  ;;  %v82_v4 = vsub.f32 %v28_v24, %v231_v0  ;;  %v90_v6 = vsub.f32 %v32_v28, %v231_v0  ;;  %v98_v11 = vsub.f32 %v38_v30, %v231_v0 }
  0x1d   :  { %v77_v3 = vsub.f32 %v23_v21, %v234_v1  ;;  %v83_v5 = vsub.f32 %v29_v25, %v234_v1  ;;  %v91_v7 = vsub.f32 %v33_v29, %v234_v1  ;;  %v99_v13 = vsub.f32 %v39_v31, %v234_v1 }
  0x1e   :  { %v78_v8 = vmul.f32 1.442695, %v76_v2  ;;  %v84_v10 = vmul.f32 1.442695, %v82_v4  ;;  %v92_v14 = vmul.f32 1.442695, %v90_v6  ;;  %v106_v15 = vsub.f32 %v42_v38, %v231_v0 }
  0x1f   :  { %v80_v9 = vmul.f32 1.442695, %v77_v3  ;;  %v86_v12 = vmul.f32 1.442695, %v83_v5  ;;  %v94_v16 = vmul.f32 1.442695, %v91_v7  ;;  %v107_v17 = vsub.f32 %v43_v39, %v234_v1 }
  0x20   :  { %161 = vpow2.f32 %v78_v8  ;;  %v100_v18 = vmul.f32 1.442695, %v98_v11  ;;  %v114_v19 = vsub.f32 %v46_v44, %v231_v0  ;;  %v102_v20 = vmul.f32 1.442695, %v99_v13 }
  0x21   :  { %163 = vpow2.f32 %v80_v9  ;;  %v115_v21 = vsub.f32 %v47_v45, %v234_v1  ;;  %v108_v22 = vmul.f32 1.442695, %v106_v15  ;;  %v122_v23 = vsub.f32 %v50_v48, %v231_v0 }
  0x22   :  { %165 = vpow2.f32 %v84_v10  ;;  %v110_v24 = vmul.f32 1.442695, %v107_v17  ;;  %v123_v25 = vsub.f32 %v51_v49, %v234_v1  ;;  %v116_v27 = vmul.f32 1.442695, %v114_v19 }
  0x23   :  { %167 = vpow2.f32 %v86_v12  ;;  %v130_v28 = vsub.f32 %v54_v54, %v231_v0  ;;  %v118_v30 = vmul.f32 1.442695, %v115_v21  ;;  %v131_v31 = vsub.f32 %v223_v55, %v234_v1 }
  0x24   :  { %169 = vpow2.f32 %v92_v14  ;;  %v124_v33 = vmul.f32 1.442695, %v122_v23  ;;  %v138_v34 = vsub.f32 %v225_v58, %v231_v0  ;;  %v126_v37 = vmul.f32 1.442695, %v123_v25 }
  0x25   :  { %171 = vpow2.f32 %v94_v16  ;;  %v139_v38 = vsub.f32 %v227_v59, %v234_v1  ;;  %v132_v41 = vmul.f32 1.442695, %v130_v28  ;;  %v134_v44 = vmul.f32 1.442695, %v131_v31 }
  0x26   :  { %v162_v26 = vpop.eup %161  ;;  %173 = vpow2.f32 %v100_v18  ;;  %v140_v47 = vmul.f32 1.442695, %v138_v34 }
  0x27   :  { %v164_v29 = vpop.eup %163  ;;  %175 = vpow2.f32 %v102_v20  ;;  %v142_v50 = vmul.f32 1.442695, %v139_v38 }
  0x28   :  { %v166_v32 = vpop.eup %165  ;;  %177 = vpow2.f32 %v108_v22 }
  0x29   :  { %v168_v35 = vpop.eup %167  ;;  %v88_v36 = vadd.f32 %v166_v32, %v162_v26  ;;  %179 = vpow2.f32 %v110_v24 }
  0x2a   :  { %v170_v39 = vpop.eup %169  ;;  %v89_v40 = vadd.f32 %v168_v35, %v164_v29  ;;  %181 = vpow2.f32 %v116_v27 }
  0x2b   :  { %v172_v42 = vpop.eup %171  ;;  %v96_v43 = vadd.f32 %v170_v39, %v88_v36  ;;  %183 = vpow2.f32 %v118_v30 }
  0x2c   :  { %v174_v45 = vpop.eup %173  ;;  %v97_v46 = vadd.f32 %v172_v42, %v89_v40  ;;  %185 = vpow2.f32 %v124_v33 }
  0x2d   :  { %v176_v48 = vpop.eup %175  ;;  %v104_v49 = vadd.f32 %v174_v45, %v96_v43  ;;  %187 = vpow2.f32 %v126_v37 }
  0x2e   :  { %v178_v51 = vpop.eup %177  ;;  %v105_v52 = vadd.f32 %v176_v48, %v97_v46  ;;  %189 = vpow2.f32 %v132_v41 }
  0x2f   :  { %v180_v53 = vpop.eup %179  ;;  %v112_v54 = vadd.f32 %v178_v51, %v104_v49  ;;  %191 = vpow2.f32 %v134_v44 }
  0x30   :  { %v182_v55 = vpop.eup %181  ;;  %v113_v56 = vadd.f32 %v180_v53, %v105_v52  ;;  %193 = vpow2.f32 %v140_v47 }
  0x31   :  { %v184_v57 = vpop.eup %183  ;;  %v120_v58 = vadd.f32 %v182_v55, %v112_v54  ;;  %195 = vpow2.f32 %v142_v50 }
  0x32   :  { %v186_v59 = vpop.eup %185  ;;  %v121_v60 = vadd.f32 %v184_v57, %v113_v56 }
  0x33   :  { %v188_v61 = vpop.eup %187  ;;  %v128_v62 = vadd.f32 %v186_v59, %v120_v58 }
  0x34   :  { %v190_v63 = vpop.eup %189  ;;  %v129_v2 = vadd.f32 %v188_v61, %v121_v60 }
  0x35   :  { %v192_v3 = vpop.eup %191  ;;  %v136_v4 = vadd.f32 %v190_v63, %v128_v62 }
  0x36   :  { %v194_v5 = vpop.eup %193  ;;  %v137_v6 = vadd.f32 %v192_v3, %v129_v2 }
  0x37   :  { %v196_v7 = vpop.eup %195  ;;  %v144_v8 = vadd.f32 %v194_v5, %v136_v4 }
  0x38   :  { %v145_v9 = vadd.f32 %v196_v7, %v137_v6 }
  0x39   :  { %197 = vlog2.f32 %v144_v8 }
  0x3a   :  { %199 = vlog2.f32 %v145_v9 }
  0x3f   :  { %v198_v10 = vpop.eup %197 }
  0x40   :  { %v200_v11 = vpop.eup %199  ;;  %v147_v12 = vmul.f32 0.6931472, %v198_v10 }
  0x41   :  { %v149_v13 = vmul.f32 0.6931472, %v200_v11 }
  0x42   :  { %v150_v14 = vadd.f32 %v147_v12, %v231_v0 }
  0x43   :  { %v151_v15 = vadd.f32 %v149_v13, %v234_v1 }
  0x44   :  { %152 = vst [vmem:[%s266_s1] sm:$0xff] %v150_v14 }
  0x45   :  { %153 = vst [vmem:[%s266_s1 + $0x8] sm:$0xff] %v151_v15 }

</bundles_post_ra>
